<compile_context>
chip_gen: v7x
topology: tpu7x:2x2x1
jax: 0.10.0
libtpu: 0.0.40
codegen_flags: <defaults>
</compile_context>

<pallas_src>
import functools

import jax
import jax.numpy as jnp
import numpy as np
from jax.experimental import pallas as pl
from jax.experimental.pallas import tpu as pltpu


def _make_divisible(v, divisor=8, min_value=None):
    if min_value is None:
        min_value = divisor
    new_v = max(min_value, int(v + divisor / 2) // divisor * divisor)
    if new_v < 0.9 * v:
        new_v += divisor
    return new_v


def _vmem_capacity_bytes():
    """Physical VMEM bytes for this generation; conservative fallback = 64 MiB."""
    try:
        info = pltpu.get_tpu_info()
        cap = int(getattr(info, "vmem_capacity_bytes", 0) or 0)
        if cap > 0:
            return cap
    except Exception:
        pass
    return 64 << 20


def _pick_tile_b(B, plane_bytes, target_bytes=4 << 20):
    """Largest divisor of B whose grouped block stays <= target_bytes."""
    for t in range(B, 0, -1):
        if B % t == 0 and t * plane_bytes <= target_bytes:
            return t
    return 1


def _pick_phase1_tile(S_pad, C, itemsize, cap):
    """Largest 128-multiple divisor of S_pad (<=4096) fitting the phase-1 budget."""
    budget = (cap * 35) // 100
    m_max = S_pad // 128
    for m in range(min(m_max, 32), 0, -1):
        t = m * 128
        need = 2 * C * t * itemsize + C * t * 4 + C * 128 * 4
        if S_pad % t == 0 and need <= budget:
            return t
    return 128


def _pick_phase2_tile(S_pad, C, itemsize, cap):
    """Largest 128-multiple divisor of S_pad (<=8192) fitting 2x-in + 2x-out buffers."""
    budget = (cap * 35) // 100
    m_max = S_pad // 128
    for m in range(min(m_max, 64), 0, -1):
        t = m * 128
        if S_pad % t == 0 and 4 * C * t * itemsize <= budget:
            return t
    return 128


def _excitation(mean, w1_ref, b1_ref, w2_ref, b2_ref):
    """Squeeze-and-excitation MLP: mean (N, C) f32 -> gate (N, C) f32."""
    h = jnp.dot(mean, w1_ref[...], preferred_element_type=jnp.float32) + b1_ref[...]
    h = h * jnp.tanh(jax.nn.softplus(h))                          # Mish
    g = jnp.dot(h, w2_ref[...], preferred_element_type=jnp.float32) + b2_ref[...]
    return jax.nn.sigmoid(g)


# ---------------------------------------------------------------------------
# Fused single-pass kernel: pool -> MLP -> scale, one HBM read + one write.
# ---------------------------------------------------------------------------
def _se_fused_kernel(x_ref, w1_ref, b1_ref, w2_ref, b2_ref, o_ref, *, inv_s):
    x = x_ref[...]                                               # (tb, C, S)
    xf = x.astype(jnp.float32)
    mean = jnp.sum(xf, axis=-1) * inv_s                          # (tb, C)
    g = _excitation(mean, w1_ref, b1_ref, w2_ref, b2_ref)        # (tb, C) f32
    gate = g[:, :, None].astype(x.dtype)                         # (tb, C, 1)
    o_ref[...] = (x * gate).astype(o_ref.dtype)


# ---------------------------------------------------------------------------
# Two-phase fallback, phase 1: tiled pool (lane-preserving acc) + MLP epilogue.
# ---------------------------------------------------------------------------
def _se_gate_kernel(x_ref, w1_ref, b1_ref, w2_ref, b2_ref, gate_ref, acc_ref,
                    *, inv_s, n_chunks):
    s = pl.program_id(1)

    @pl.when(s == 0)
    def _():
        acc_ref[...] = jnp.zeros_like(acc_ref)

    # Lane-preserving partial sum: fold the tile into 128-lane chunks with
    # pure VPU adds; the cross-lane (XLU) reduce happens only in the epilogue.
    xf = x_ref[...].astype(jnp.float32)                          # (1, C, tile_s)
    part = xf[:, :, 0:128]
    for k in range(1, n_chunks):
        part = part + xf[:, :, k * 128:(k + 1) * 128]
    acc_ref[...] += part                                         # (1, C, 128)

    @pl.when(s == pl.num_programs(1) - 1)
    def _():
        mean = jnp.sum(acc_ref[...], axis=-1) * inv_s            # (1, C)
        g = _excitation(mean, w1_ref, b1_ref, w2_ref, b2_ref)    # (1, C) f32
        gate_ref[...] = g[:, :, None].astype(gate_ref.dtype)     # (1, C, 1)


# ---------------------------------------------------------------------------
# Two-phase fallback, phase 2: lane-dense broadcast scale.
# ---------------------------------------------------------------------------
def _se_scale_kernel(x_ref, g_ref, o_ref):
    x = x_ref[...]                                               # (1, C, tile_s2)
    gate = g_ref[...].astype(x.dtype)                            # (1, C, 1)
    o_ref[...] = (x * gate).astype(o_ref.dtype)


def se_layer_pallas(x_nchw, w1, b1, w2, b2, *, force_two_phase=False):
    """x_nchw: (B, C, H, W); w1: (C, Hd); b1: (1, Hd); w2: (Hd, C); b2: (1, C)."""
    B, C, H, W = x_nchw.shape
    S = H * W
    Hd = w1.shape[1]

    # NCHW -> (B, C, S): contiguous reshape, no transpose, no extra HBM pass.
    x = x_nchw.reshape(B, C, S)
    itemsize = jnp.dtype(x.dtype).itemsize

    cap = _vmem_capacity_bytes()
    vmem_limit = max(32 << 20, (cap * 3) // 4)

    plane_bytes = C * S * itemsize
    # Fused needs ~2x in + 2x out double-buffered blocks + an f32 working copy.
    fused_live = 4 * plane_bytes + C * S * 4
    use_fused = (not force_two_phase) and (fused_live <= (cap * 6) // 10)

    if use_fused:
        # ---- Fused single pass: grid over batch, batch axis "parallel" -----
        tile_b = _pick_tile_b(B, plane_bytes)
        grid = (B // tile_b,)
        out = pl.pallas_call(
            functools.partial(_se_fused_kernel, inv_s=1.0 / S),
            out_shape=jax.ShapeDtypeStruct((B, C, S), x.dtype),
            grid_spec=pltpu.PrefetchScalarGridSpec(
                num_scalar_prefetch=0,
                grid=grid,
                in_specs=[
                    pl.BlockSpec((tile_b, C, S), lambda b: (b, 0, 0)),
                    pl.BlockSpec((C, Hd), lambda b: (0, 0)),
                    pl.BlockSpec((1, Hd), lambda b: (0, 0)),
                    pl.BlockSpec((Hd, C), lambda b: (0, 0)),
                    pl.BlockSpec((1, C), lambda b: (0, 0)),
                ],
                out_specs=pl.BlockSpec((tile_b, C, S), lambda b: (b, 0, 0)),
            ),
            compiler_params=pltpu.CompilerParams(
                dimension_semantics=("parallel",),
                vmem_limit_bytes=vmem_limit),
        )(x, w1, b1, w2, b2)
        return out.reshape(B, C, H, W)

    # ---- Two-phase fallback (plane too big for VMEM) ------------------------
    # Keep S-tiles 128-aligned; pad S if needed (zeros don't perturb the sum,
    # the mean divides by the true S, and padded lanes are sliced off).
    S_pad = S if S % 128 == 0 else ((S + 127) // 128) * 128
    x_p = x if S_pad == S else jnp.pad(x, ((0, 0), (0, 0), (0, S_pad - S)))

    # Phase 1: per-batch channel gates (B, C, 1).
    tile_s = _pick_phase1_tile(S_pad, C, itemsize, cap)
    n_s = S_pad // tile_s
    gate = pl.pallas_call(
        functools.partial(_se_gate_kernel, inv_s=1.0 / S, n_chunks=tile_s // 128),
        out_shape=jax.ShapeDtypeStruct((B, C, 1), jnp.float32),
        grid_spec=pltpu.PrefetchScalarGridSpec(
            num_scalar_prefetch=0,
            grid=(B, n_s),
            in_specs=[
                pl.BlockSpec((1, C, tile_s), lambda b, s: (b, 0, s)),
                pl.BlockSpec((C, Hd), lambda b, s: (0, 0)),
                pl.BlockSpec((1, Hd), lambda b, s: (0, 0)),
                pl.BlockSpec((Hd, C), lambda b, s: (0, 0)),
                pl.BlockSpec((1, C), lambda b, s: (0, 0)),
            ],
            out_specs=pl.BlockSpec((1, C, 1), lambda b, s: (b, 0, 0)),
            scratch_shapes=[pltpu.VMEM((1, C, 128), jnp.float32)],
        ),
        compiler_params=pltpu.CompilerParams(
            dimension_semantics=("parallel", "arbitrary"),
            vmem_limit_bytes=vmem_limit),
    )(x_p, w1, b1, w2, b2)

    # Phase 2: broadcast scale with an independently sized lane-dense tile.
    tile_s2 = _pick_phase2_tile(S_pad, C, itemsize, cap)
    n_s2 = S_pad // tile_s2
    out = pl.pallas_call(
        _se_scale_kernel,
        out_shape=jax.ShapeDtypeStruct((B, C, S_pad), x.dtype),
        grid_spec=pltpu.PrefetchScalarGridSpec(
            num_scalar_prefetch=0,
            grid=(B, n_s2),
            in_specs=[
                pl.BlockSpec((1, C, tile_s2), lambda b, s: (b, 0, s)),
                pl.BlockSpec((1, C, 1), lambda b, s: (b, 0, 0)),
            ],
            out_specs=pl.BlockSpec((1, C, tile_s2), lambda b, s: (b, 0, s)),
        ),
        compiler_params=pltpu.CompilerParams(
            dimension_semantics=("parallel", "parallel"),
            vmem_limit_bytes=vmem_limit),
    )(x_p, gate)

    if S_pad != S:
        out = out[:, :, :S]
    return out.reshape(B, C, H, W)


def se_layer_ref(x_nchw, w1, b1, w2, b2):
    """Plain-JAX reference with identical semantics."""
    mean = jnp.mean(x_nchw, axis=(2, 3))                         # (B, C)
    h = mean @ w1 + b1                                           # (B, Hd)
    h = h * jnp.tanh(jax.nn.softplus(h))
    y = jax.nn.sigmoid(h @ w2 + b2)                              # (B, C)
    return x_nchw * y[:, :, None, None]


def _init_params(key, C, reduction=4):
    """Deterministic init mimicking nn.Conv2d defaults (uniform +/- 1/sqrt(fan_in)).
    Conv weights (out, in, 1, 1) are collapsed to matmul form (in, out)."""
    hidden = _make_divisible(C // reduction)
    k1, kb1, k2, kb2 = jax.random.split(key, 4)
    bound1 = 1.0 / np.sqrt(C)       # conv1: in_channels = oup = C
    bound2 = 1.0 / np.sqrt(hidden)  # conv2: in_channels = hidden
    w1 = jax.random.uniform(k1, (C, hidden), jnp.float32, -bound1, bound1)
    b1 = jax.random.uniform(kb1, (1, hidden), jnp.float32, -bound1, bound1)
    w2 = jax.random.uniform(k2, (hidden, C), jnp.float32, -bound2, bound2)
    b2 = jax.random.uniform(kb2, (1, C), jnp.float32, -bound2, bound2)
    return w1, b1, w2, b2


if __name__ == "__main__":
    key = jax.random.PRNGKey(0)
    # (B, C, H, W, force_two_phase): exercise both the fused path and the
    # two-phase fallback, at 128-aligned and non-aligned spatial sizes.
    cases = [
        (2, 4, 16, 16, False),   # fused single-pass, S = 256 (128-aligned)
        (2, 4, 16, 16, True),    # two-phase fallback, aligned S
        (2, 8, 10, 10, False),   # fused single-pass, S = 100 (non-aligned)
        (2, 8, 10, 10, True),    # two-phase fallback with S padding
    ]
    for (B, C, H, W, force) in cases:
        key, kx, kp = jax.random.split(key, 3)
        x = jax.random.normal(kx, (B, C, H, W), dtype=jnp.float32)
        w1, b1, w2, b2 = _init_params(kp, C)
        out = se_layer_pallas(x, w1, b1, w2, b2, force_two_phase=force)
        out = jax.block_until_ready(out)
        ref = se_layer_ref(x, w1, b1, w2, b2)
        np.testing.assert_allclose(np.asarray(out), np.asarray(ref),
                                   rtol=1e-5, atol=1e-5)
    print("KERNEL_OK")
</pallas_src>

<mosaic_0001>
module attributes {stable_mosaic.version = 11 : i64} {
  func.func @_se_fused_kernel(%arg0: i32, %arg1: memref<2x4x256xf32, #tpu.memory_space<vmem>>, %arg2: memref<4x8xf32, #tpu.memory_space<vmem>>, %arg3: memref<1x8xf32, #tpu.memory_space<vmem>>, %arg4: memref<8x4xf32, #tpu.memory_space<vmem>>, %arg5: memref<1x4xf32, #tpu.memory_space<vmem>>, %arg6: memref<2x4x256xf32, #tpu.memory_space<vmem>>) attributes {dimension_semantics = [#tpu.dimension_semantics<parallel>], iteration_bounds = array<i64: 1>, scalar_prefetch = 0 : i64, scratch_operands = 0 : i64, tpu.core_type = #tpu.core_type<tc>, window_params = [{transform_indices = @transform_0, window_bounds = array<i64: 2, 4, 256>}, {pipeline_mode = #tpu.pipeline_mode<synchronous>, transform_indices = @transform_1, window_bounds = array<i64: 4, 8>}, {pipeline_mode = #tpu.pipeline_mode<synchronous>, transform_indices = @transform_2, window_bounds = array<i64: 1, 8>}, {pipeline_mode = #tpu.pipeline_mode<synchronous>, transform_indices = @transform_3, window_bounds = array<i64: 8, 4>}, {pipeline_mode = #tpu.pipeline_mode<synchronous>, transform_indices = @transform_4, window_bounds = array<i64: 1, 4>}, {transform_indices = @transform_5, window_bounds = array<i64: 2, 4, 256>}]} {
    %c0 = arith.constant 0 : index
    %c0_0 = arith.constant 0 : index
    %c0_1 = arith.constant 0 : index
    %0 = vector.load %arg1[%c0, %c0_0, %c0_1] : memref<2x4x256xf32, #tpu.memory_space<vmem>>, vector<2x4x256xf32>
    %cst = arith.constant dense<0.000000e+00> : vector<2x4xf32>
    %1 = vector.multi_reduction <add>, %0, %cst [2] : vector<2x4x256xf32> to vector<2x4xf32>
    %cst_2 = arith.constant 3.906250e-03 : f32
    %2 = vector.broadcast %cst_2 : f32 to vector<2x4xf32>
    %3 = arith.mulf %1, %2 : vector<2x4xf32>
    %c0_3 = arith.constant 0 : index
    %c0_4 = arith.constant 0 : index
    %4 = vector.load %arg2[%c0_3, %c0_4] : memref<4x8xf32, #tpu.memory_space<vmem>>, vector<4x8xf32>
    %cst_5 = arith.constant dense<0.000000e+00> : vector<2x8xf32>
    %5 = tpu.matmul %3, %4, %cst_5 {dimension_numbers = #tpu.dot_dimension_numbers<[1], [0], [0], [1], [0, 0, 1, 1], [], []>} : vector<2x4xf32>, vector<4x8xf32>, vector<2x8xf32> -> vector<2x8xf32>
    %c0_6 = arith.constant 0 : index
    %c0_7 = arith.constant 0 : index
    %6 = vector.load %arg3[%c0_6, %c0_7] : memref<1x8xf32, #tpu.memory_space<vmem>>, vector<1x8xf32>
    %7 = vector.broadcast %6 : vector<1x8xf32> to vector<2x8xf32>
    %8 = arith.addf %5, %7 : vector<2x8xf32>
    %cst_8 = arith.constant 0.000000e+00 : f32
    %9 = vector.broadcast %cst_8 : f32 to vector<2x8xf32>
    %10 = arith.maximumf %8, %9 : vector<2x8xf32>
    %11 = vector.broadcast %cst_8 : f32 to vector<2x8xf32>
    %12 = arith.subf %8, %11 : vector<2x8xf32>
    %13 = arith.cmpf one, %12, %12 : vector<2x8xf32>
    %14 = vector.broadcast %cst_8 : f32 to vector<2x8xf32>
    %15 = arith.addf %8, %14 : vector<2x8xf32>
    %16 = math.absf %12 : vector<2x8xf32>
    %cst_9 = arith.constant 0.000000e+00 : f32
    %17 = vector.broadcast %cst_9 : f32 to vector<2x8xf32>
    %18 = arith.subf %17, %16 : vector<2x8xf32>
    %19 = math.exp %18 : vector<2x8xf32>
    %20 = math.log1p %19 : vector<2x8xf32>
    %21 = arith.addf %10, %20 : vector<2x8xf32>
    %22 = arith.select %13, %15, %21 : vector<2x8xi1>, vector<2x8xf32>
    %23 = math.tanh %22 : vector<2x8xf32>
    %24 = arith.mulf %8, %23 : vector<2x8xf32>
    %c0_10 = arith.constant 0 : index
    %c0_11 = arith.constant 0 : index
    %25 = vector.load %arg4[%c0_10, %c0_11] : memref<8x4xf32, #tpu.memory_space<vmem>>, vector<8x4xf32>
    %cst_12 = arith.constant dense<0.000000e+00> : vector<2x4xf32>
    %26 = tpu.matmul %24, %25, %cst_12 {dimension_numbers = #tpu.dot_dimension_numbers<[1], [0], [0], [1], [0, 0, 1, 1], [], []>} : vector<2x8xf32>, vector<8x4xf32>, vector<2x4xf32> -> vector<2x4xf32>
    %c0_13 = arith.constant 0 : index
    %c0_14 = arith.constant 0 : index
    %27 = vector.load %arg5[%c0_13, %c0_14] : memref<1x4xf32, #tpu.memory_space<vmem>>, vector<1x4xf32>
    %28 = vector.broadcast %27 : vector<1x4xf32> to vector<2x4xf32>
    %29 = arith.addf %26, %28 : vector<2x4xf32>
    %30 = arith.negf %29 : vector<2x4xf32>
    %31 = math.exp %30 : vector<2x4xf32>
    %cst_15 = arith.constant 1.000000e+00 : f32
    %32 = vector.broadcast %cst_15 : f32 to vector<2x4xf32>
    %33 = arith.addf %32, %31 : vector<2x4xf32>
    %34 = arith.divf %32, %33 : vector<2x4xf32>
    %35 = vector.shape_cast %34 : vector<2x4xf32> to vector<2x4x1xf32>
    %36 = vector.broadcast %35 : vector<2x4x1xf32> to vector<2x4x256xf32>
    %37 = arith.mulf %0, %36 : vector<2x4x256xf32>
    %c0_16 = arith.constant 0 : index
    %c0_17 = arith.constant 0 : index
    %c0_18 = arith.constant 0 : index
    %38 = vector.load %arg6[%c0_16, %c0_17, %c0_18] : memref<2x4x256xf32, #tpu.memory_space<vmem>>, vector<2x4x256xf32>
    tpu.vector_store %arg6[%c0_16, %c0_17, %c0_18], %37 {strides = array<i32>} : memref<2x4x256xf32, #tpu.memory_space<vmem>>, vector<2x4x256xf32>,
    return
  }
  func.func @transform_0(%arg0: i32) -> (i32, i32, i32) {
    %c0_i32 = arith.constant 0 : i32
    %c0_i32_0 = arith.constant 0 : i32
    %c0_i32_1 = arith.constant 0 : i32
    return %arg0, %c0_i32, %c0_i32_0 : i32, i32, i32
  }
  func.func @transform_1(%arg0: i32) -> (i32, i32) {
    %c0_i32 = arith.constant 0 : i32
    %c0_i32_0 = arith.constant 0 : i32
    %c0_i32_1 = arith.constant 0 : i32
    return %c0_i32, %c0_i32_0 : i32, i32
  }
  func.func @transform_2(%arg0: i32) -> (i32, i32) {
    %c0_i32 = arith.constant 0 : i32
    %c0_i32_0 = arith.constant 0 : i32
    %c0_i32_1 = arith.constant 0 : i32
    return %c0_i32, %c0_i32_0 : i32, i32
  }
  func.func @transform_3(%arg0: i32) -> (i32, i32) {
    %c0_i32 = arith.constant 0 : i32
    %c0_i32_0 = arith.constant 0 : i32
    %c0_i32_1 = arith.constant 0 : i32
    return %c0_i32, %c0_i32_0 : i32, i32
  }
  func.func @transform_4(%arg0: i32) -> (i32, i32) {
    %c0_i32 = arith.constant 0 : i32
    %c0_i32_0 = arith.constant 0 : i32
    %c0_i32_1 = arith.constant 0 : i32
    return %c0_i32, %c0_i32_0 : i32, i32
  }
  func.func @transform_5(%arg0: i32) -> (i32, i32, i32) {
    %c0_i32 = arith.constant 0 : i32
    %c0_i32_0 = arith.constant 0 : i32
    %c0_i32_1 = arith.constant 0 : i32
    return %arg0, %c0_i32, %c0_i32_0 : i32, i32, i32
  }
}

</mosaic_0001>

<bundles_post_ra>
// kernel: tpu_custom_call.1
= control target key start
LH: loop header
LB: loop body
LE: loop exit
PB: predicated region body
PF: predicated region fallthrough
CT: control target
= control target key end

     0   :  { %10 = vsyncpa [#allocation3], 0  ;;  %s498_s0 = inlined_call_operand.hbm [shape: f32[2,4,256], index: 0, kind: input, shape index: {}]   ;;  %s499_s1 = inlined_call_operand.vmem [shape: f32[4,8], index: 1, kind: input, shape index: {}]   ;;  %s500_s2 = inlined_call_operand.vmem [shape: f32[1,8], index: 2, kind: input, shape index: {}]   ;;  %s501_s3 = inlined_call_operand.vmem [shape: f32[8,4], index: 3, kind: input, shape index: {}]   ;;  %s502_s4 = inlined_call_operand.vmem [shape: f32[1,4], index: 4, kind: input, shape index: {}]   ;;  %s503_s5 = inlined_call_operand.hbm [shape: f32[2,4,256], index: 5, kind: output, shape index: {}]  }
   0x1   :  { %11 = vsyncpa [#allocation4], 0  ;;  %s402_s18 = smov [#allocation2]   ;;  %s354_s22 = scalar_lea.hbm %s498_s0, 256 }
   0x2   :  { %s17_s19 = sshll.u32 %s402_s18, 4  ;;  %p355_p0 = scmp.ne.s32.totalorder %s498_s0, %s354_s22  ;;  %s18_s19 = int_to_ptr.vmem [resolvable:$true] %s17_s19 }
   0x3   :  { %p358_p1 = scmp.lt.u32.totalorder %s354_s22, %s498_s0 }
   0x5   :  { %p360_p2 = pnand %p358_p1, %p355_p0 }
   0x7   :  { %363 = shalt.err (!%p360_p2)
}
   0x8   :  { %s364_s27 = scalar_lea.vmem %s18_s19, 256  ;;  %p369_p4 = scmp.lt.s32.totalorder %s18_s19, %s18_s19 }
   0x9   :  { %p365_p3 = scmp.ne.s32.totalorder %s18_s19, %s364_s27  ;;  %p370_p5 = scmp.lt.s32.totalorder %s364_s27, %s364_s27 }
   0xb   :  { %p371_p6 = por %p370_p5, %p369_p4 }
   0xd   :  { %p372_p7 = pnand %p371_p6, %p365_p3 }
   0xf   :  { %375 = shalt.err (!%p372_p7)
}
  0x10   :  { %s403_s28 = smov 128   ;;  %s404_s29 = smov 8  }
  0x11   :  { %23 = dma.hbm_to_vmem [thread:$0]  %s498_s0, 256, %s18_s19, [#allocation3], %s403_s28, %s403_s28, %s404_s29  }
  0x12   :  { %398 = dma.done.wait [#allocation3], 256  }
  0x13   :  { %399 = vsyncadd [#allocation3], 4294967040  ;;  %vm43_vm0 = vcmask 1043456   ;;  %v454_v0 = vld [vmem:[#allocation2] sm:$0xff]  ;;  %v456_v1 = vld [vmem:[#allocation2 + $0x8] sm:$0xff]  ;;  %v405_v11 = vmov 0.0   ;;  %v66_v12 = vlaneseq }
  0x14   :  { %v39_v2 = vcombine.high %v454_v0, %v454_v0  ;;  %v44_v3 = vsel %vm43_vm0, %v454_v0, 0.0  ;;  %v40_v4 = vcombine.high %v456_v1, %v456_v1  ;;  %v49_v6 = vsel %vm43_vm0, %v456_v1, 0.0  ;;  %v56_v10 = vld [vmem:[%s499_s1] sm:$0xf]  ;;  %325 = vmatprep.subr.mxu0 %v405_v11  ;;  %330 = vmatprep.subr.mxu1 %v405_v11 }
  0x15   :  { %vm406_vm1 = vmmov 0   ;;  %326 = vmatpush3.msk.msra.mxu0 %vm43_vm0, %v56_v10  ;;  %v67_v13 = vand.u32 127, %v66_v12  ;;  %v69_v14 = vshrl.u32 %v66_v12, 7  ;;  %vm76_vm2 = vcmask 1041409   ;;  %v174_v23 = vld [vmem:[%s501_s3] sm:$0xff] }
  0x16   :  { %v45_v5 = vsel %vm43_vm0, %v39_v2, 0.0  ;;  %v50_v7 = vsel %vm43_vm0, %v40_v4, 0.0  ;;  %327 = vmatprep.mubr.msk.f32.mxu0 %vm406_vm1, %v405_v11  ;;  %332 = vmatprep.mubr.msk.f32.mxu1 %vm406_vm1, %v405_v11  ;;  %vm78_vm3 = vcmask 31744   ;;  %v315_v24 = vld [vmem:[%s500_s2] ss:$0 sm:$0xff]  ;;  %vm182_vm6 = vcmask 64512  }
  0x17   :  { %v46_v8 = vadd.f32 %v45_v5, %v44_v3  ;;  %v51_v9 = vadd.f32 %v50_v7, %v49_v6  ;;  %v70_v16 = vsub.s32 %v67_v13, %v69_v14  ;;  %331 = vmatpush3.msra.mxu1 %v174_v23  ;;  %v318_v45 = vld [vmem:[%s502_s4] ss:$0 sm:$0xff]  ;;  %v264_v52 = vsub.s32 0, %v69_v14  ;;  %s408_s4 = smov [#allocation5]  }
  0x18   :  { %v271_v55 = vsub.s32 1, %v69_v14  ;;  %v407_v57 = vmov 839922192   ;;  %s303_s11 = sshll.u32 %s408_s4, 4  ;;  %s304_s11 = int_to_ptr.vmem [resolvable:$true] %s303_s11 }
  0x19   :  { %47 = vadd.xlane.f32.xlu0 %v46_v8  ;;  %v279_v58 = vunpack.c.l.s4 %v407_v57  ;;  %s376_s12 = scalar_lea.vmem %s304_s11, 256  ;;  %p381_p9 = scmp.lt.s32.totalorder %s304_s11, %s304_s11 }
  0x1a   :  { %p377_p8 = scmp.ne.s32.totalorder %s304_s11, %s376_s12  ;;  %p382_p10 = scmp.lt.s32.totalorder %s376_s12, %s376_s12 }
  0x1b   :  { %v280_v59 = vunpack.c.0.s8 %v279_v58 }
  0x1c   :  { %p383_p11 = por %p382_p10, %p381_p9 }
  0x1d   :  { %52 = vadd.xlane.f32.xlu0 %v51_v9  ;;  %v283_v60 = vsub.s32 %v280_v59, %v69_v14 }
  0x1e   :  { %p384_p12 = pnand %p383_p11, %p377_p8 }
  0xa6   :  { %v48_v15 = vpop.xlane.xlu0 %47 }
  0xa7   :  { %v54_v17 = vmul.f32 0.00390625, %v48_v15 }
  0xa9   :  { %v71_v20 = vrot.slane %v54_v17, %v70_v16 }
  0xaa   :  { %v53_v18 = vpop.xlane.xlu0 %52 }
  0xab   :  { %v55_v19 = vmul.f32 0.00390625, %v53_v18 }
  0xad   :  { %v75_v21 = vrot.slane %v55_v19, %v70_v16 }
  0xaf   :  { %v77_v22 = vsel %vm76_vm2, %v75_v21, %v71_v20 }
  0xb0   :  { %328 = vmatmul.mubr.msk.f32.vlgmr.msra.gmra.mrb[0].mxu0 %vm78_vm3, %v77_v22 }
 0x183   :  { %v150_v25 = vpop.f32.mrb[0].mxu0 }
 0x184   :  { %v151_v26 = vadd.f32 %v315_v24, %v150_v25  ;;  %v329_v27 = vpop.f32.mrb[1].mxu0 }
 0x186   :  { %v157_v28 = vand.u32 2147483647, %v151_v26  ;;  %v154_v39 = vmax.f32 %v151_v26, 0.0  ;;  %vm155_vm5 = vcmp.ne.f32.partialorder %v151_v26, %v151_v26 }
 0x188   :  { %v158_v29 = vsub.f32 0.0, %v157_v28 }
 0x18a   :  { %v159_v30 = vmul.f32 1.442695, %v158_v29 }
 0x18c   :  { %344 = vpow2.f32 %v159_v30 }
 0x196   :  { %v345_v31 = vpop.eup %344 }
 0x197   :  { %v161_v32 = vadd.f32 1.0, %v345_v31  ;;  %v164_v33 = vmul.f32 -0.5, %v345_v31  ;;  %v167_v35 = vand.u32 2147483647, %v345_v31 }
 0x199   :  { %346 = vlog2.f32 %v161_v32  ;;  %v165_v34 = vadd.f32 1.0, %v164_v33  ;;  %vm168_vm4 = vcmp.lt.f32.partialorder %v167_v35, 0.0004427343 }
 0x19b   :  { %v166_v38 = vmul.f32 %v345_v31, %v165_v34 }
 0x1a3   :  { %v347_v36 = vpop.eup %346 }
 0x1a4   :  { %v163_v37 = vmul.f32 0.6931472, %v347_v36 }
 0x1a6   :  { %v169_v40 = vsel %vm168_vm4, %v166_v38, %v163_v37 }
 0x1a7   :  { %v170_v41 = vadd.f32 %v169_v40, %v154_v39 }
 0x1a9   :  { %v171_v42 = vsel %vm155_vm5, %v151_v26, %v170_v41 }
 0x1aa   :  { %348 = vtanh.f32 %v171_v42 }
 0x1b4   :  { %v349_v43 = vpop.eup %348 }
 0x1b5   :  { %v173_v44 = vmul.f32 %v349_v43, %v151_v26 }
 0x1b7   :  { %333 = vmatmul.mubr.msk.f32.vlgmr.msra.gmra.mrb[0].mxu1 %vm182_vm6, %v173_v44 }
 0x28a   :  { %v252_v46 = vpop.f32.mrb[0].mxu1 }
 0x28b   :  { %v253_v47 = vadd.f32 %v318_v45, %v252_v46  ;;  %v334_v48 = vpop.f32.mrb[1].mxu1 }
 0x28d   :  { %v320_v49 = vmul.f32 -1.442695, %v253_v47 }
 0x28f   :  { %350 = vpow2.f32 %v320_v49 }
 0x299   :  { %v351_v50 = vpop.eup %350 }
 0x29a   :  { %v259_v51 = vadd.f32 1.0, %v351_v50 }
 0x29c   :  { %352 = vrcp.f32 %v259_v51 }
 0x2a6   :  { %v353_v53 = vpop.eup %352 }
 0x2a7   :  { %v265_v54 = vrot.slane %v353_v53, %v264_v52  ;;  %v272_v56 = vrot.slane %v353_v53, %v271_v55 }
 0x2a9   :  { %267 = vbcast.lane.b32.xlu1 %v265_v54, 256 }
 0x2ad   :  { %274 = vbcast.lane.b32.xlu1 %v272_v56, 256 }
 0x31b   :  { %v268_v61 = vpop.permute.xlu1 %267 }
 0x31c   :  { %v284_v62 = vrot.slane %v268_v61, %v283_v60 }
 0x31e   :  { %v294_v63 = vmul.f32 %v284_v62, %v454_v0 }
 0x31f   :  { %v275_v2 = vpop.permute.xlu1 %274 }
 0x320   :  { %296 = vst [vmem:[#allocation5] sm:$0xff] %v294_v63  ;;  %v291_v3 = vrot.slane %v275_v2, %v283_v60 }
 0x322   :  { %v295_v4 = vmul.f32 %v291_v3, %v456_v1 }
 0x324   :  { %297 = vst [vmem:[#allocation5 + $0x8] sm:$0xff] %v295_v4 }
 0x325   :  { %387 = shalt.err (!%p384_p12)
}
 0x326   :  { %s388_s15 = scalar_lea.hbm %s503_s5, 256 }
 0x327   :  { %p389_p13 = scmp.ne.s32.totalorder %s503_s5, %s388_s15  ;;  %p392_p0 = scmp.lt.u32.totalorder %s388_s15, %s503_s5 }
 0x329   :  { %p394_p1 = pnand %p392_p0, %p389_p13 }
 0x32b   :  { %397 = shalt.err (!%p394_p1)
}
 0x32c   :  { %309 = dma.vmem_to_hbm [thread:$0]  %s304_s11, 256, %s503_s5, [#allocation4], %s403_s28, %s403_s28, %s404_s29  }
 0x32d   :  { %400 = dma.done.wait [#allocation4], 256  }
 0x32e   :  { %401 = vsyncadd [#allocation4], 4294967040 }
 0x32f   :  { %313 = vsyncpa [#allocation3], 1 }
 0x330   :  { %314 = vsyncpa [#allocation4], 1 }

</bundles_post_ra>
